<compile_context>
chip_gen: v7x
topology: tpu7x:2x2x1
jax: 0.10.0
libtpu: 0.0.40
codegen_flags: <defaults>
</compile_context>

<pallas_src>
import jax
import jax.numpy as jnp
import numpy as np
from jax import lax
from jax.experimental import pallas as pl
from jax.experimental.pallas import tpu as pltpu


def nano_bias_kernel(bias_ref, sp_ref, et_ref, tbl_sp_ref, tbl_et_ref,
                     vd_ref, mask_ref, out_ref):
    """Per (batch-tile, lane-tile) kernel.

    bias_ref   : [Bt, 1, TM] f32   flattened attention bias (zero-padded)
    sp_ref     : [Bt, 1, TM] i32   spatial idx in [0,Vs); -1 on ring / pad lanes
    et_ref     : [Bt, E, TM] i32   edge idx in [0,Ve);    -1 on ring / pad lanes
    tbl_sp_ref : [H, Vs_pad] f32   spatial embedding table (transposed)
    tbl_et_ref : [H, Ve_pad] f32   edge embedding table (transposed, * 1/E)
    vd_ref     : [H, 1]      f32   graph_token_virtual_distance weight
    mask_ref   : [1, TM]     f32   1.0 where row==0 or col==0 (graph-token ring)
    out_ref    : [Bt, H, TM] f32
    """
    Bt = out_ref.shape[0]
    TM = out_ref.shape[-1]
    E = et_ref.shape[1]
    Vs_pad = tbl_sp_ref.shape[1]
    Ve_pad = tbl_et_ref.shape[1]
    f32 = jnp.float32

    # Hoisted once per grid step, reused for all Bt batch elements.
    iota_sp = lax.broadcasted_iota(jnp.int32, (Vs_pad, TM), 0)
    iota_et = lax.broadcasted_iota(jnp.int32, (Ve_pad, TM), 0)
    tbl_sp = tbl_sp_ref[...]                      # [H, Vs_pad]
    tbl_et = tbl_et_ref[...]                      # [H, Ve_pad]
    vd_add = vd_ref[...] * mask_ref[...]          # [H,1]*[1,TM] -> [H,TM]

    def process(bt):
        sp_b = sp_ref[bt]                         # [1, TM]
        et_b = et_ref[bt]                         # [E, TM]
        # Split compare ranges: spatial only vs the Vs_pad slab, each edge
        # feature only vs the Ve_pad slab.  -1 (ring / pad) matches nothing.
        oh_sp = (iota_sp == sp_b).astype(f32)                   # [Vs_pad, TM]
        cnt = (iota_et == et_b[0:1, :]).astype(f32)              # [Ve_pad, TM]
        for e in range(1, E):
            cnt = cnt + (iota_et == et_b[e:e + 1, :]).astype(f32)
        # MXU lookups: spatial bias + mean edge bias (edge table pre-scaled).
        emb = (jnp.dot(tbl_sp, oh_sp, preferred_element_type=f32)
               + jnp.dot(tbl_et, cnt, preferred_element_type=f32))  # [H, TM]
        # graph_bias = bias(per head) + spatial + vd_ring + edge + bias
        out_ref[bt] = 2.0 * bias_ref[bt] + vd_add + emb

    if Bt <= 4:
        for bt in range(Bt):                      # short static unroll
            process(bt)
    else:
        # Keep vreg pressure flat for larger batch tiles.
        def body(bt, carry):
            process(bt)
            return carry
        lax.fori_loop(0, Bt, body, 0, unroll=2)


def nano_bias_forward(bias, spatial_position, attn_edge_type,
                      spatial_table, edge_table, vdist_weight):
    """bias: [B, N+1, N+1] f32; spatial_position: [B, N, N] int;
    attn_edge_type: [B, N, N, E] int; spatial_table: [num_spatial, H];
    edge_table: [num_edges+1, H]; vdist_weight: [1, H].
    Returns [B, H, N+1, N+1]."""
    f32, i32 = jnp.float32, jnp.int32
    B, Np1, _ = bias.shape
    M = Np1 * Np1
    Vs, H = spatial_table.shape
    Ve = edge_table.shape[0]
    E = attn_edge_type.shape[-1]

    Vs_pad = ((Vs + 7) // 8) * 8
    Ve_pad = ((Ve + 7) // 8) * 8

    # ---- lane tiling: balanced tiles, multiples of 128 (lane-dense stores),
    #      capped so the [V_pad, TM] one-hot intermediates stay small ----
    tm_cap = min(2048,
                 max(128, (((4 << 20) // ((Vs_pad + Ve_pad) * 4)) // 128) * 128))
    nt = pl.cdiv(M, tm_cap)
    TM = pl.cdiv(pl.cdiv(M, nt), 128) * 128
    M_pad = nt * TM

    # ---- batch tiling: ~192KB output block per step, >=2 batch tiles when
    #      nt == 1 (feeds both v7x TCs), a handful of total steps, Bt | B ----
    Bt = max(1, min(B, (192 * 1024) // (H * TM * 4)))
    if nt == 1 and B >= 2:
        Bt = min(Bt, max(1, B // 2))
    while Bt > 1 and pl.cdiv(B, Bt) * nt < 4:
        Bt = max(1, Bt // 2)
    while B % Bt != 0:
        Bt -= 1

    # ---- split lookup tables (f32: bf16 would break 1e-5 fidelity) ----
    tbl_sp = jnp.zeros((H, Vs_pad), f32).at[:, :Vs].set(
        spatial_table.T.astype(f32))
    tbl_et = jnp.zeros((H, Ve_pad), f32).at[:, :Ve].set(
        edge_table.T.astype(f32) * (1.0 / E))
    vd_col = vdist_weight.reshape(H, 1).astype(f32)

    # ---- flattened, padded operands (one ring pad + one lane pad each) ----
    bias_flat = jnp.pad(bias.astype(f32).reshape(B, 1, M),
                        ((0, 0), (0, 0), (0, M_pad - M)))

    sp = jnp.pad(spatial_position.astype(i32), ((0, 0), (1, 0), (1, 0)),
                 constant_values=-1).reshape(B, 1, M)
    sp = jnp.pad(sp, ((0, 0), (0, 0), (0, M_pad - M)), constant_values=-1)

    et = jnp.pad(jnp.transpose(attn_edge_type.astype(i32), (0, 3, 1, 2)),
                 ((0, 0), (0, 0), (1, 0), (1, 0)),
                 constant_values=-1).reshape(B, E, M)
    et = jnp.pad(et, ((0, 0), (0, 0), (0, M_pad - M)), constant_values=-1)

    # Graph-token ring mask (row 0 or col 0); zero on lane pad.
    row = lax.broadcasted_iota(i32, (Np1, Np1), 0)
    col = lax.broadcasted_iota(i32, (Np1, Np1), 1)
    vmask = ((row == 0) | (col == 0)).astype(f32).reshape(1, M)
    vmask = jnp.pad(vmask, ((0, 0), (0, M_pad - M)))

    grid = (B // Bt, nt)

    out = pl.pallas_call(
        nano_bias_kernel,
        out_shape=jax.ShapeDtypeStruct((B, H, M_pad), f32),
        grid_spec=pltpu.PrefetchScalarGridSpec(
            num_scalar_prefetch=0,
            grid=grid,
            in_specs=[
                pl.BlockSpec((Bt, 1, TM), lambda bb, mi: (bb, 0, mi)),  # bias
                pl.BlockSpec((Bt, 1, TM), lambda bb, mi: (bb, 0, mi)),  # sp idx
                pl.BlockSpec((Bt, E, TM), lambda bb, mi: (bb, 0, mi)),  # edge idx
                pl.BlockSpec((H, Vs_pad), lambda bb, mi: (0, 0)),       # sp table
                pl.BlockSpec((H, Ve_pad), lambda bb, mi: (0, 0)),       # et table
                pl.BlockSpec((H, 1), lambda bb, mi: (0, 0)),            # vdist
                pl.BlockSpec((1, TM), lambda bb, mi: (0, mi)),          # ring mask
            ],
            out_specs=pl.BlockSpec((Bt, H, TM), lambda bb, mi: (bb, 0, mi)),
        ),
        compiler_params=pltpu.CompilerParams(
            dimension_semantics=("parallel", "parallel"),
            vmem_limit_bytes=32 * 1024 * 1024),
    )(bias_flat, sp, et, tbl_sp, tbl_et, vd_col, vmask)

    if M_pad == M:
        return out.reshape(B, H, Np1, Np1)
    # TODO(synk): when M % 128 != 0 this depad slice costs one extra output
    # HBM pass; fold it into the consumer if this bias feeds a fused attention.
    return out[:, :, :M].reshape(B, H, Np1, Np1)


def nano_bias_reference(bias, sp, aet, sp_table, edge_table, vd):
    """Pure-JAX reference of the intended PyTorch forward (non-multihop path)."""
    B, Np1, _ = bias.shape
    H = sp_table.shape[1]
    gb = jnp.broadcast_to(bias[:, None], (B, H, Np1, Np1))
    spb = jnp.transpose(sp_table[sp], (0, 3, 1, 2))             # [B,H,N,N]
    gb = gb.at[:, :, 1:, 1:].add(spb)
    gb = gb.at[:, :, 1:, 0].add(vd.reshape(1, H, 1))
    gb = gb.at[:, :, 0, :].add(vd.reshape(1, H, 1))
    eb = jnp.transpose(edge_table[aet].mean(-2), (0, 3, 1, 2))  # [B,H,N,N]
    gb = gb.at[:, :, 1:, 1:].add(eb)
    return gb + bias[:, None]


def run_case(key, B, N, num_heads, num_spatial, num_edges, E):
    k1, k2, k3, k4, k5, k6 = jax.random.split(key, 6)
    # Deterministic params: init_params -> Embedding weights ~ N(0, 0.02).
    edge_table = 0.02 * jax.random.normal(k1, (num_edges + 1, num_heads),
                                          jnp.float32)
    spatial_table = 0.02 * jax.random.normal(k2, (num_spatial, num_heads),
                                             jnp.float32)
    vdist_weight = 0.02 * jax.random.normal(k3, (1, num_heads), jnp.float32)
    # batched_data (edge_input / x exist in the dict but are unused here).
    bias = jax.random.normal(k4, (B, N + 1, N + 1), jnp.float32)
    spatial_position = jax.random.randint(k5, (B, N, N), 0, num_spatial)
    attn_edge_type = jax.random.randint(k6, (B, N, N, E), 0, num_edges + 1)

    out = jax.jit(nano_bias_forward)(bias, spatial_position, attn_edge_type,
                                     spatial_table, edge_table, vdist_weight)
    out = jax.block_until_ready(out)

    ref = nano_bias_reference(bias, spatial_position, attn_edge_type,
                              spatial_table, edge_table, vdist_weight)
    np.testing.assert_allclose(np.asarray(out), np.asarray(ref),
                               rtol=1e-5, atol=1e-5)


if __name__ == "__main__":
    key = jax.random.PRNGKey(0)
    k1, k2, k3 = jax.random.split(key, 3)
    # Small config consistent with the module: grid=(2,1), static-unroll path.
    run_case(k1, B=2, N=8, num_heads=8, num_spatial=20, num_edges=16, E=3)
    # Multi lane-tile path: M=2209 (not a multiple of 128), grid=(3,2),
    # exercises -1 pad lanes and the lane depad slice.
    run_case(k2, B=3, N=46, num_heads=8, num_spatial=20, num_edges=16, E=3)
    # Large-batch / small-M path: Bt=10 -> fori_loop branch, grid=(4,1).
    run_case(k3, B=40, N=8, num_heads=8, num_spatial=20, num_edges=16, E=3)
    print("KERNEL_OK")
</pallas_src>

<mosaic_0001>
module attributes {stable_mosaic.version = 11 : i64} {
  func.func @nano_bias_kernel(%arg0: i32, %arg1: i32, %arg2: memref<1x1x128xf32, #tpu.memory_space<vmem>>, %arg3: memref<1x1x128xi32, #tpu.memory_space<vmem>>, %arg4: memref<1x3x128xi32, #tpu.memory_space<vmem>>, %arg5: memref<8x24xf32, #tpu.memory_space<vmem>>, %arg6: memref<8x24xf32, #tpu.memory_space<vmem>>, %arg7: memref<8x1xf32, #tpu.memory_space<vmem>>, %arg8: memref<1x128xf32, #tpu.memory_space<vmem>>, %arg9: memref<1x8x128xf32, #tpu.memory_space<vmem>>) attributes {dimension_semantics = [#tpu.dimension_semantics<parallel>, #tpu.dimension_semantics<parallel>], iteration_bounds = array<i64: 2, 1>, scalar_prefetch = 0 : i64, scratch_operands = 0 : i64, tpu.core_type = #tpu.core_type<tc>, window_params = [{transform_indices = @transform_0, window_bounds = array<i64: 1, 1, 128>}, {transform_indices = @transform_1, window_bounds = array<i64: 1, 1, 128>}, {transform_indices = @transform_2, window_bounds = array<i64: 1, 3, 128>}, {pipeline_mode = #tpu.pipeline_mode<synchronous>, transform_indices = @transform_3, window_bounds = array<i64: 8, 24>}, {pipeline_mode = #tpu.pipeline_mode<synchronous>, transform_indices = @transform_4, window_bounds = array<i64: 8, 24>}, {pipeline_mode = #tpu.pipeline_mode<synchronous>, transform_indices = @transform_5, window_bounds = array<i64: 8, 1>}, {transform_indices = @transform_6, window_bounds = array<i64: 1, 128>}, {transform_indices = @transform_7, window_bounds = array<i64: 1, 8, 128>}]} {
    %0 = tpu.iota {dimensions = array<i32: 0>} : vector<24x128xi32>
    %1 = tpu.iota {dimensions = array<i32: 0>} : vector<24x128xi32>
    %c0 = arith.constant 0 : index
    %c0_0 = arith.constant 0 : index
    %2 = vector.load %arg5[%c0, %c0_0] : memref<8x24xf32, #tpu.memory_space<vmem>>, vector<8x24xf32>
    %c0_1 = arith.constant 0 : index
    %c0_2 = arith.constant 0 : index
    %3 = vector.load %arg6[%c0_1, %c0_2] : memref<8x24xf32, #tpu.memory_space<vmem>>, vector<8x24xf32>
    %c0_3 = arith.constant 0 : index
    %c0_4 = arith.constant 0 : index
    %4 = vector.load %arg7[%c0_3, %c0_4] : memref<8x1xf32, #tpu.memory_space<vmem>>, vector<8x1xf32>
    %c0_5 = arith.constant 0 : index
    %c0_6 = arith.constant 0 : index
    %5 = vector.load %arg8[%c0_5, %c0_6] : memref<1x128xf32, #tpu.memory_space<vmem>>, vector<1x128xf32>
    %6 = vector.broadcast %4 : vector<8x1xf32> to vector<8x128xf32>
    %7 = vector.broadcast %5 : vector<1x128xf32> to vector<8x128xf32>
    %8 = arith.mulf %6, %7 : vector<8x128xf32>
    %c0_7 = arith.constant 0 : index
    %c0_8 = arith.constant 0 : index
    %c0_9 = arith.constant 0 : index
    %9 = vector.load %arg3[%c0_7, %c0_8, %c0_9] : memref<1x1x128xi32, #tpu.memory_space<vmem>>, vector<1x1x128xi32>
    %10 = vector.shape_cast %9 : vector<1x1x128xi32> to vector<1x128xi32>
    %c0_10 = arith.constant 0 : index
    %c0_11 = arith.constant 0 : index
    %c0_12 = arith.constant 0 : index
    %11 = vector.load %arg4[%c0_10, %c0_11, %c0_12] : memref<1x3x128xi32, #tpu.memory_space<vmem>>, vector<1x3x128xi32>
    %12 = vector.shape_cast %11 : vector<1x3x128xi32> to vector<3x128xi32>
    %13 = vector.broadcast %10 : vector<1x128xi32> to vector<24x128xi32>
    %14 = arith.cmpi eq, %0, %13 : vector<24x128xi32>
    %15 = arith.extui %14 : vector<24x128xi1> to vector<24x128xi32>
    %16 = arith.sitofp %15 : vector<24x128xi32> to vector<24x128xf32>
    %17 = vector.extract_strided_slice %12 {offsets = [0, 0], sizes = [1, 128], strides = [1, 1]} : vector<3x128xi32> to vector<1x128xi32>
    %18 = vector.broadcast %17 : vector<1x128xi32> to vector<24x128xi32>
    %19 = arith.cmpi eq, %1, %18 : vector<24x128xi32>
    %20 = arith.extui %19 : vector<24x128xi1> to vector<24x128xi32>
    %21 = arith.sitofp %20 : vector<24x128xi32> to vector<24x128xf32>
    %22 = vector.extract_strided_slice %12 {offsets = [1, 0], sizes = [1, 128], strides = [1, 1]} : vector<3x128xi32> to vector<1x128xi32>
    %23 = vector.broadcast %22 : vector<1x128xi32> to vector<24x128xi32>
    %24 = arith.cmpi eq, %1, %23 : vector<24x128xi32>
    %25 = arith.extui %24 : vector<24x128xi1> to vector<24x128xi32>
    %26 = arith.sitofp %25 : vector<24x128xi32> to vector<24x128xf32>
    %27 = arith.addf %21, %26 : vector<24x128xf32>
    %28 = vector.extract_strided_slice %12 {offsets = [2, 0], sizes = [1, 128], strides = [1, 1]} : vector<3x128xi32> to vector<1x128xi32>
    %29 = vector.broadcast %28 : vector<1x128xi32> to vector<24x128xi32>
    %30 = arith.cmpi eq, %1, %29 : vector<24x128xi32>
    %31 = arith.extui %30 : vector<24x128xi1> to vector<24x128xi32>
    %32 = arith.sitofp %31 : vector<24x128xi32> to vector<24x128xf32>
    %33 = arith.addf %27, %32 : vector<24x128xf32>
    %cst = arith.constant dense<0.000000e+00> : vector<8x128xf32>
    %34 = tpu.matmul %2, %16, %cst {dimension_numbers = #tpu.dot_dimension_numbers<[1], [0], [0], [1], [0, 0, 1, 1], [], []>} : vector<8x24xf32>, vector<24x128xf32>, vector<8x128xf32> -> vector<8x128xf32>
    %cst_13 = arith.constant dense<0.000000e+00> : vector<8x128xf32>
    %35 = tpu.matmul %3, %33, %cst_13 {dimension_numbers = #tpu.dot_dimension_numbers<[1], [0], [0], [1], [0, 0, 1, 1], [], []>} : vector<8x24xf32>, vector<24x128xf32>, vector<8x128xf32> -> vector<8x128xf32>
    %36 = arith.addf %34, %35 : vector<8x128xf32>
    %c0_14 = arith.constant 0 : index
    %c0_15 = arith.constant 0 : index
    %c0_16 = arith.constant 0 : index
    %37 = vector.load %arg2[%c0_14, %c0_15, %c0_16] : memref<1x1x128xf32, #tpu.memory_space<vmem>>, vector<1x1x128xf32>
    %38 = vector.shape_cast %37 : vector<1x1x128xf32> to vector<1x128xf32>
    %cst_17 = arith.constant 2.000000e+00 : f32
    %39 = vector.broadcast %cst_17 : f32 to vector<1x128xf32>
    %40 = arith.mulf %39, %38 : vector<1x128xf32>
    %41 = vector.broadcast %40 : vector<1x128xf32> to vector<8x128xf32>
    %42 = arith.addf %41, %8 : vector<8x128xf32>
    %43 = arith.addf %42, %36 : vector<8x128xf32>
    %c0_18 = arith.constant 0 : index
    %c0_19 = arith.constant 0 : index
    %c0_20 = arith.constant 0 : index
    %44 = vector.load %arg9[%c0_18, %c0_19, %c0_20] : memref<1x8x128xf32, #tpu.memory_space<vmem>>, vector<1x8x128xf32>
    %45 = vector.shape_cast %44 : vector<1x8x128xf32> to vector<8x128xf32>
    %46 = vector.shape_cast %43 : vector<8x128xf32> to vector<1x8x128xf32>
    tpu.vector_store %arg9[%c0_18, %c0_19, %c0_20], %46 {strides = array<i32>} : memref<1x8x128xf32, #tpu.memory_space<vmem>>, vector<1x8x128xf32>,
    return
  }
  func.func @transform_0(%arg0: i32, %arg1: i32) -> (i32, i32, i32) {
    %c0_i32 = arith.constant 0 : i32
    %c0_i32_0 = arith.constant 0 : i32
    return %arg0, %c0_i32, %arg1 : i32, i32, i32
  }
  func.func @transform_1(%arg0: i32, %arg1: i32) -> (i32, i32, i32) {
    %c0_i32 = arith.constant 0 : i32
    %c0_i32_0 = arith.constant 0 : i32
    return %arg0, %c0_i32, %arg1 : i32, i32, i32
  }
  func.func @transform_2(%arg0: i32, %arg1: i32) -> (i32, i32, i32) {
    %c0_i32 = arith.constant 0 : i32
    %c0_i32_0 = arith.constant 0 : i32
    return %arg0, %c0_i32, %arg1 : i32, i32, i32
  }
  func.func @transform_3(%arg0: i32, %arg1: i32) -> (i32, i32) {
    %c0_i32 = arith.constant 0 : i32
    %c0_i32_0 = arith.constant 0 : i32
    %c0_i32_1 = arith.constant 0 : i32
    return %c0_i32, %c0_i32_0 : i32, i32
  }
  func.func @transform_4(%arg0: i32, %arg1: i32) -> (i32, i32) {
    %c0_i32 = arith.constant 0 : i32
    %c0_i32_0 = arith.constant 0 : i32
    %c0_i32_1 = arith.constant 0 : i32
    return %c0_i32, %c0_i32_0 : i32, i32
  }
  func.func @transform_5(%arg0: i32, %arg1: i32) -> (i32, i32) {
    %c0_i32 = arith.constant 0 : i32
    %c0_i32_0 = arith.constant 0 : i32
    %c0_i32_1 = arith.constant 0 : i32
    return %c0_i32, %c0_i32_0 : i32, i32
  }
  func.func @transform_6(%arg0: i32, %arg1: i32) -> (i32, i32) {
    %c0_i32 = arith.constant 0 : i32
    %c0_i32_0 = arith.constant 0 : i32
    return %c0_i32, %arg1 : i32, i32
  }
  func.func @transform_7(%arg0: i32, %arg1: i32) -> (i32, i32, i32) {
    %c0_i32 = arith.constant 0 : i32
    %c0_i32_0 = arith.constant 0 : i32
    return %arg0, %c0_i32, %arg1 : i32, i32, i32
  }
}

</mosaic_0001>

<bundles_post_ra>
// kernel: nano_bias_forward.1
= control target key start
LH: loop header
LB: loop body
LE: loop exit
PB: predicated region body
PF: predicated region fallthrough
CT: control target
= control target key end

     0   :  { %s880_s24 = smov 0   ;;  %s882_s25 = smov 0   ;;  %s951_s0 = inlined_call_operand.vmem [shape: f32[2,1,128], index: 0, kind: input, shape index: {}]   ;;  %s952_s1 = inlined_call_operand.vmem [shape: s32[2,1,128], index: 1, kind: input, shape index: {}]   ;;  %s953_s2 = inlined_call_operand.vmem [shape: s32[2,3,128], index: 2, kind: input, shape index: {}]   ;;  %s954_s3 = inlined_call_operand.vmem [shape: f32[8,24], index: 3, kind: input, shape index: {}]   ;;  %s955_s4 = inlined_call_operand.vmem [shape: f32[8,24], index: 4, kind: input, shape index: {}]   ;;  %s956_s5 = inlined_call_operand.vmem [shape: f32[8,1], index: 5, kind: input, shape index: {}]   ;;  %s957_s6 = inlined_call_operand.vmem [shape: f32[1,128], index: 6, kind: input, shape index: {}]   ;;  %s958_s7 = inlined_call_operand.vmem [shape: f32[2,8,128], index: 7, kind: output, shape index: {}]  }
   0x1   :  { %s884_s26 = smov 0  }
   0x2 LB: > { %s29_s27 = sadd.s32 1, %s828_s25  ;;  %p723_p0 = scmp.ge.s32.totalorder %s832_s26, 1  ;;  %s832_s26 = sphi %s884_s26, %s17_s26   ;;  %s828_s25 = sphi %s882_s25, %s960_s25   ;;  %s824_s24 = sphi %s880_s24, %s959_s24  }
   0x3   : > { %p31_p1 = scmp.ge.s32.totalorder %s29_s27, 2  ;;  %p289_p2 = scmp.lt.s32.totalorder %s832_s26, 3 }
   0x5   : > { %s962_s27 = smov (%p31_p1, %s29_s27), 0  ;;  %p290_p3 = pnand %p723_p0, %p289_p2 }
   0x6   : > { %p340_p4 = scmp.lt.s32.totalorder (!%p290_p3), %s824_s24, 1  ;;  %v369_v0 = vlaneseq (!%p290_p3)  ;;  %v834_v1 = vmov (!%p290_p3), 0.0|0.0   ;;  %v375_v2 = vld [vmem:[%s956_s5] sm:$0xff] (!%p290_p3)  ;;  %vm835_vm0 = vmmov (!%p290_p3), 0   ;;  %v836_v4 = vmov (!%p290_p3), 0.0  }
   0x7   : > { %293 = sbr.rel (%p290_p3) target bundleno = 250 (0xfa), region = 48  ;;  %776 = vmatprep.subr.bf16.mxu1 (!%p290_p3), %v834_v1  ;;  %773 = vmatprep.subr.bf16.mxu0 (!%p290_p3), %v834_v1  ;;  %v837_v5 = vmov (!%p290_p3), 0   ;;  %v838_v16 = vmov (!%p290_p3), 1.0|1.0   ;;  %vm449_vm5 = vcmask (!%p290_p3), 195584   ;;  %v373_v21 = vld [vmem:[%s954_s3] sm:$0xff] (!%p290_p3) }
   0x8   : > { %v903_v3 = vshrl.u32 (!%p290_p3), %v369_v0, 7  ;;  %770 = vmatprep.mubr.msk.f32.mxu1 (!%p290_p3), %vm835_vm0, %v836_v4  ;;  %761 = vmatprep.mubr.msk.f32.mxu0 (!%p290_p3), %vm835_vm0, %v836_v4  ;;  %v839_v26 = vmov (!%p290_p3), 1.0   ;;  %v374_v35 = vld [vmem:[%s955_s4] sm:$0xff] (!%p290_p3) }
   0x9   : > { %809 = vset.pattern.permute.xlu0 (!%p290_p3), %v837_v5  ;;  %v726_v39 = vld [vmem:[%s957_s6] ss:$0 sm:$0xff] (!%p290_p3) }
   0xa   : > { %v371_v6 = vadd.s32 (!%p290_p3), 8, %v903_v3  ;;  %v406_v7 = vsub.s32 (!%p290_p3), 0, %v903_v3  ;;  %v419_v8 = vsub.s32 (!%p290_p3), 1, %v903_v3  ;;  %v435_v9 = vsub.s32 (!%p290_p3), 2, %v903_v3  ;;  %379 = vperm.xlu0 (!%p290_p3), %809, %v375_v2  }
   0xb   : > { %v372_v12 = vadd.s32 (!%p290_p3), 16, %v903_v3 }
   0xe   : > { %s964_s24 = smov (!%p340_p4, %s824_s24), 1 }
   0xf   : > { %s351_s9 = scalar_lea.vmem %s952_s1, %s964_s24  ;;  %s724_s10 = sshll.u32 %s964_s24, 2 }
  0x10   : > { %v727_v10 = vld [vmem:[%s351_s9] ss:$0 sm:$0xff]  ;;  %s358_s13 = scalar_lea.vmem %s953_s2, %s724_s10  ;;  %s345_s20 = scalar_lea.vmem %s951_s0, %s964_s24 }
  0x11   : > { %vm395_vm1 = vcmp.eq.s32.totalorder %v903_v3, %v727_v10  ;;  %vm396_vm2 = vcmp.eq.s32.totalorder %v371_v6, %v727_v10  ;;  %v390_v11 = vld [vmem:[%s358_s13] sm:$0x7]  ;;  %vm397_vm4 = vcmp.eq.s32.totalorder %v372_v12, %v727_v10  ;;  %s725_s23 = sshll.u32 %s964_s24, 3 }
  0x12   : > { %vm777_vm3 = vmpackc.low %vm396_vm2, %vm395_vm1  ;;  %v407_v13 = vrot.slane %v390_v11, %v406_v7  ;;  %v420_v14 = vrot.slane %v390_v11, %v419_v8  ;;  %v436_v15 = vrot.slane %v390_v11, %v435_v9  ;;  %v596_v36 = vld [vmem:[%s345_s20] sm:$0x1]  ;;  %s368_s30 = scalar_lea.vmem %s958_s7, %s725_s23 }
  0x13   : > { %778 = vmatpush3.bf16.msk.msra.mxu1 %vm777_vm3, %v838_v16  ;;  %v597_v37 = vmul.f32 2.0, %v596_v36 }
  0x14   : > { %vm408_vm6 = vcmp.eq.s32.totalorder %v903_v3, %v407_v13  ;;  %vm409_vm7 = vcmp.eq.s32.totalorder %v371_v6, %v407_v13  ;;  %vm421_vm8 = vcmp.eq.s32.totalorder %v903_v3, %v420_v14  ;;  %vm422_vm9 = vcmp.eq.s32.totalorder %v371_v6, %v420_v14  ;;  %768 = vmatprep.subr.mxu1 %v836_v4 }
  0x15   : > { %v731_v17 = vsel %vm408_vm6, 1.0, %v836_v4  ;;  %v732_v18 = vsel %vm409_vm7, 1.0, %v836_v4  ;;  %v734_v19 = vsel %vm421_vm8, 1.0, %v836_v4  ;;  %v735_v20 = vsel %vm422_vm9, 1.0, %v836_v4 }
  0x16   : > { %v430_v22 = vadd.f32 %v734_v19, %v731_v17  ;;  %v431_v23 = vadd.f32 %v735_v20, %v732_v18  ;;  %vm437_vm10 = vcmp.eq.s32.totalorder %v903_v3, %v436_v15  ;;  %vm438_vm11 = vcmp.eq.s32.totalorder %v371_v6, %v436_v15 }
  0x17   : > { %v737_v24 = vsel %vm437_vm10, 1.0, %v836_v4  ;;  %v738_v25 = vsel %vm438_vm11, 1.0, %v836_v4  ;;  %769 = vmatpush3.msk.msra.mxu1 %vm397_vm4, %v839_v26  ;;  %vm410_vm12 = vcmp.eq.s32.totalorder %v372_v12, %v407_v13  ;;  %vm423_vm13 = vcmp.eq.s32.totalorder %v372_v12, %v420_v14 }
  0x18   : > { %v446_v27 = vadd.f32 %v737_v24, %v430_v22  ;;  %v447_v28 = vadd.f32 %v738_v25, %v431_v23  ;;  %v733_v29 = vsel %vm410_vm12, 1.0, %v836_v4  ;;  %v736_v30 = vsel %vm423_vm13, 1.0, %v836_v4  ;;  %771 = vmatmul.mubr.msk.f32.vlgmr.msra.gmra.mrb[0].mxu1 %vm449_vm5, %v373_v21 }
  0x19   : > { %v432_v31 = vadd.f32 %v736_v30, %v733_v29  ;;  %vm439_vm14 = vcmp.eq.s32.totalorder %v372_v12, %v436_v15  ;;  %v602_v43 = vrot.slane %v597_v37, %v406_v7 }
  0x1a   : > { %v774_v32 = vpack.c.bf16 %v447_v28, %v446_v27  ;;  %v739_v33 = vsel %vm439_vm14, 1.0, %v836_v4 }
  0x1b   : > { %v448_v34 = vadd.f32 %v739_v33, %v432_v31 }
  0x1c   : > { %775 = vmatpush3.bf16.msra.mxu0 %v774_v32 }
  0x1d   : > { %759 = vmatprep.subr.mxu0 %v836_v4 }
  0x20   : > { %760 = vmatpush3.msra.mxu0 %v448_v34 }
  0x21   : > { %762 = vmatmul.mubr.msk.f32.vlgmr.msra.gmra.mrb[0].mxu0 %vm449_vm5, %v374_v35 }
  0x89   : > { %v380_v40 = vpop.permute.xlu0 %379 }
  0x8a   : > { %v388_v42 = vmul.f32 %v726_v39, %v380_v40 }
  0x8c   : > { %v604_v44 = vadd.f32 %v602_v43, %v388_v42 }
  0xeb   : > { %v592_v38 = vpop.f32.mrb[0].mxu1 }
  0xec   : > { %v772_v41 = vpop.f32.mrb[1].mxu1 }
  0xf4   : > { %v519_v45 = vpop.f32.mrb[0].mxu0 }
  0xf5   : > { %v593_v46 = vadd.f32 %v592_v38, %v519_v45  ;;  %v763_v47 = vpop.f32.mrb[1].mxu0 }
  0xf7   : > { %v605_v48 = vadd.f32 %v604_v44, %v593_v46 }
  0xf9   : > { %606 = vst [vmem:[%s368_s30] sm:$0xff] %v605_v48 }
  0xfa PF: > { %s17_s26 = sadd.s32 1, %s832_s26   ;;  %s959_s24 = smov %s828_s25 }
  0xfb   : > { %p14_p5 = scmp.ge.s32.totalorder %s17_s26, 4   ;;  %s960_s25 = smov %s962_s27 }
  0xfd   :  { %16 = sbr.rel (!%p14_p5) target bundleno = 2 (0x2), region = 87 }

</bundles_post_ra>
